<compile_context>
chip_gen: v7x
topology: tpu7x:2x2x1
jax: 0.10.0
libtpu: 0.0.40
codegen_flags: <defaults>
</compile_context>

<pallas_src>
import functools

import jax
import jax.numpy as jnp
from jax.experimental import pallas as pl
from jax.experimental.pallas import tpu as pltpu


def _round_up(x, m):
    return ((x + m - 1) // m) * m


# -----------------------------------------------------------------------------
# Kernel: one batch tile, all three classification heads fused.
# -----------------------------------------------------------------------------
def _fused_heads_kernel(x_ref, dw_ref, db_ref, ow_ref, ob_ref, o_ref,
                        *, n_heads, hpad):
    # x_ref : [TILE_B, Hpad]           bf16   (CLS reps for this batch tile)
    # dw_ref: [Hpad, n_heads*Hpad]     bf16   (all heads' dense weights, packed)
    # db_ref: [1, n_heads*Hpad]        f32
    # ow_ref: [n_heads, Hpad, Lpad]    bf16
    # ob_ref: [n_heads, 1, Lpad]       f32
    # o_ref : [n_heads, TILE_B, Lpad]  f32    (lane-dense per-head logits)
    x = x_ref[...]
    # One wide-N MXU matmul covering all heads' dense layers.
    h = jnp.dot(x, dw_ref[...], preferred_element_type=jnp.float32)   # [TILE_B, n*Hpad]
    h = jnp.tanh(h + db_ref[...])                                     # f32 activation math
    hb = h.astype(jnp.bfloat16)
    for i in range(n_heads):                                          # static, unrolled
        hi = hb[:, i * hpad:(i + 1) * hpad]                           # lane-aligned slice
        oi = jnp.dot(hi, ow_ref[i], preferred_element_type=jnp.float32)   # [TILE_B, Lpad]
        o_ref[i] = oi + ob_ref[i]                                     # bias [1,Lpad] broadcasts


# -----------------------------------------------------------------------------
# One-time parameter packing (hoisted out of the forward path).
# -----------------------------------------------------------------------------
def pack_params(dense_w, dense_b, out_w, out_b):
    """Repack the heads' f32 parameters into the kernel's MXU-friendly bf16
    layout.  Call once at init / checkpoint-load time, NOT per forward."""
    n, H, _ = dense_w.shape
    Lpad = out_w.shape[-1]
    Hpad = _round_up(H, 128)            # lane-aligned per-head slices in-kernel

    dw = jnp.zeros((n, Hpad, Hpad), jnp.float32).at[:, :H, :H].set(dense_w)
    db = jnp.zeros((n, 1, Hpad), jnp.float32).at[:, :, :H].set(dense_b)
    ow = jnp.zeros((n, Hpad, Lpad), jnp.float32).at[:, :H, :].set(out_w)

    return {
        "dw_all": jnp.transpose(dw, (1, 0, 2)).reshape(Hpad, n * Hpad).astype(jnp.bfloat16),
        "db_all": jnp.transpose(db, (1, 0, 2)).reshape(1, n * Hpad),       # f32
        "ow": ow.astype(jnp.bfloat16),                                     # [n, Hpad, Lpad]
        "ob": out_b,                                                       # [n, 1, Lpad] f32
        "n_heads": n, "hidden": H, "hpad": Hpad, "lpad": Lpad,
    }


# -----------------------------------------------------------------------------
# Wrapper: batch-tiled pallas_call.
# -----------------------------------------------------------------------------
def multi_head_logits(x, packed, *, tile_b=256):
    """x: [B, H] f32 CLS reps  ->  per-head logits [n_heads, B, Lpad] (f32)."""
    n, H = packed["n_heads"], packed["hidden"]
    Hpad, Lpad = packed["hpad"], packed["lpad"]
    B = x.shape[0]

    # Batch tile: multiple of 16 (bf16 sublane packing).  Grid over batch tiles
    # gives a real "parallel" axis (v7x 2nd TC) and double-buffers x / output.
    tb = min(tile_b, max(16, _round_up(B, 16)))
    Bpad = _round_up(B, tb)

    x_p = jnp.zeros((Bpad, Hpad), jnp.bfloat16).at[:B, :H].set(x.astype(jnp.bfloat16))

    kernel = functools.partial(_fused_heads_kernel, n_heads=n, hpad=Hpad)
    # NOTE: at bert-large / big batch tiles, re-derive the VMEM budget against
    # v7x's 64 MiB (32 MiB scoped default) and pass vmem_limit_bytes explicitly.
    logits = pl.pallas_call(
        kernel,
        out_shape=jax.ShapeDtypeStruct((n, Bpad, Lpad), jnp.float32),
        grid_spec=pltpu.PrefetchScalarGridSpec(
            num_scalar_prefetch=0,
            grid=(Bpad // tb,),
            in_specs=[
                pl.BlockSpec((tb, Hpad), lambda b: (b, 0)),            # streamed x tile
                pl.BlockSpec((Hpad, n * Hpad), lambda b: (0, 0)),      # resident weights
                pl.BlockSpec((1, n * Hpad), lambda b: (0, 0)),
                pl.BlockSpec((n, Hpad, Lpad), lambda b: (0, 0, 0)),
                pl.BlockSpec((n, 1, Lpad), lambda b: (0, 0, 0)),
            ],
            out_specs=pl.BlockSpec((n, tb, Lpad), lambda b: (0, b, 0)),  # 3-D lane-dense out
        ),
        compiler_params=pltpu.CompilerParams(dimension_semantics=("parallel",)),
    )(x_p, packed["dw_all"], packed["db_all"], packed["ow"], packed["ob"])

    return logits[:, :B, :]             # drop padded batch rows; [n, B, Lpad]


# -----------------------------------------------------------------------------
# Raw (PyTorch-equivalent) parameter init.
# -----------------------------------------------------------------------------
def _init_linear(key, fan_in, fan_out):
    """PyTorch nn.Linear default init: U(-1/sqrt(fan_in), 1/sqrt(fan_in))."""
    kw, kb = jax.random.split(key)
    bound = 1.0 / float(fan_in) ** 0.5
    w = jax.random.uniform(kw, (fan_in, fan_out), jnp.float32, -bound, bound)
    b = jax.random.uniform(kb, (fan_out,), jnp.float32, -bound, bound)
    return w, b


def init_params(key, hidden, label_sizes, lpad):
    n = len(label_sizes)
    dense_w = jnp.zeros((n, hidden, hidden), jnp.float32)
    dense_b = jnp.zeros((n, 1, hidden), jnp.float32)
    out_w = jnp.zeros((n, hidden, lpad), jnp.float32)
    out_b = jnp.zeros((n, 1, lpad), jnp.float32)
    keys = jax.random.split(key, 2 * n)
    for i, L in enumerate(label_sizes):
        dw, db = _init_linear(keys[2 * i], hidden, hidden)
        ow, ob = _init_linear(keys[2 * i + 1], hidden, L)
        dense_w = dense_w.at[i].set(dw)
        dense_b = dense_b.at[i, 0].set(db)
        out_w = out_w.at[i, :, :L].set(ow)     # zero pad beyond L; sliced off before argmax
        out_b = out_b.at[i, 0, :L].set(ob)
    return dense_w, dense_b, out_w, out_b


def _cross_entropy(logits, labels):
    logp = jax.nn.log_softmax(logits, axis=-1)
    return -jnp.mean(jnp.take_along_axis(logp, labels[:, None], axis=-1))


# -----------------------------------------------------------------------------
# Forward matching MultiTaskSentenceClassifier.forward (given BERT output).
# -----------------------------------------------------------------------------
def multitask_forward(bert_out, packed, label_sizes,
                      label=None, aux_label1=None, aux_label2=None):
    """Dropout layers are identity in eval mode.  Predictions stay on device
    (no host int() conversion) so the forward is jit-safe."""
    sentence_reps = bert_out[:, 0, :]                          # CLS token, [B, H]
    logits_all = multi_head_logits(sentence_reps, packed)      # [n_heads, B, Lpad]
    n = len(label_sizes)
    outs = [logits_all[i, :, :label_sizes[i]] for i in range(n)]

    labels_in = (label, aux_label1, aux_label2)
    losses = [(_cross_entropy(o, l) if l is not None else None)
              for o, l in zip(outs, labels_in)]

    pred_out, pred_out1, pred_out2 = (jnp.argmax(o, axis=-1) for o in outs)
    return (pred_out, pred_out1, pred_out2, losses[0], losses[1], losses[2]), logits_all


if __name__ == "__main__":
    B, S, H = 2, 8, 32            # batch, seq len, bert hidden size (small demo shapes)
    LABEL_SIZES = (3, 4, 5)       # label_size, aux_label1_size, aux_label2_size
    LPAD = 128                    # lane-dense padded logits width

    root = jax.random.PRNGKey(0)
    k_bert, k_params, k_l0, k_l1, k_l2 = jax.random.split(root, 5)

    # Synthetic BERT encoder output [B, S, H] (stand-in for self.bert(**encoded_dict)[0]).
    bert_out = jax.random.normal(k_bert, (B, S, H), jnp.float32)

    raw_params = init_params(k_params, H, LABEL_SIZES, LPAD)
    packed = pack_params(*raw_params)          # one-time packing, not per forward

    label = jax.random.randint(k_l0, (B,), 0, LABEL_SIZES[0])
    aux_label1 = jax.random.randint(k_l1, (B,), 0, LABEL_SIZES[1])
    aux_label2 = jax.random.randint(k_l2, (B,), 0, LABEL_SIZES[2])

    (pred_out, pred_out1, pred_out2, loss, aux1_loss, aux2_loss), logits_all = (
        multitask_forward(bert_out, packed, LABEL_SIZES,
                          label=label, aux_label1=aux_label1, aux_label2=aux_label2))

    jax.block_until_ready(logits_all)
    jax.block_until_ready((pred_out, pred_out1, pred_out2))
    jax.block_until_ready((loss, aux1_loss, aux2_loss))

    # Pure-JAX f32 reference of the head computation (kernel uses bf16 weights/acts,
    # so the tolerance is loosened accordingly).
    x = bert_out[:, 0, :]
    dw, db, ow, ob = raw_params
    ref = jnp.stack([jnp.tanh(x @ dw[i] + db[i]) @ ow[i] + ob[i] for i in range(3)])
    assert jnp.allclose(ref, logits_all, atol=5e-2, rtol=5e-2), "mismatch vs reference"
    # Predictions must match the f32 reference exactly at these shapes.
    for i, p in enumerate((pred_out, pred_out1, pred_out2)):
        assert jnp.array_equal(jnp.argmax(ref[i, :, :LABEL_SIZES[i]], axis=-1), p)

    print("KERNEL_OK")
</pallas_src>

<mosaic_0001>
module attributes {stable_mosaic.version = 11 : i64} {
  func.func @_fused_heads_kernel(%arg0: i32, %arg1: memref<16x128xbf16, #tpu.memory_space<vmem>>, %arg2: memref<128x384xbf16, #tpu.memory_space<vmem>>, %arg3: memref<1x384xf32, #tpu.memory_space<vmem>>, %arg4: memref<3x128x128xbf16, #tpu.memory_space<vmem>>, %arg5: memref<3x1x128xf32, #tpu.memory_space<vmem>>, %arg6: memref<3x16x128xf32, #tpu.memory_space<vmem>>) attributes {dimension_semantics = [#tpu.dimension_semantics<parallel>], iteration_bounds = array<i64: 1>, scalar_prefetch = 0 : i64, scratch_operands = 0 : i64, tpu.core_type = #tpu.core_type<tc>, window_params = [{transform_indices = @transform_0, window_bounds = array<i64: 16, 128>}, {pipeline_mode = #tpu.pipeline_mode<synchronous>, transform_indices = @transform_1, window_bounds = array<i64: 128, 384>}, {pipeline_mode = #tpu.pipeline_mode<synchronous>, transform_indices = @transform_2, window_bounds = array<i64: 1, 384>}, {pipeline_mode = #tpu.pipeline_mode<synchronous>, transform_indices = @transform_3, window_bounds = array<i64: 3, 128, 128>}, {pipeline_mode = #tpu.pipeline_mode<synchronous>, transform_indices = @transform_4, window_bounds = array<i64: 3, 1, 128>}, {transform_indices = @transform_5, window_bounds = array<i64: 3, 16, 128>}]} {
    %c0 = arith.constant 0 : index
    %c0_0 = arith.constant 0 : index
    %0 = vector.load %arg1[%c0, %c0_0] : memref<16x128xbf16, #tpu.memory_space<vmem>>, vector<16x128xbf16>
    %c0_1 = arith.constant 0 : index
    %c0_2 = arith.constant 0 : index
    %1 = vector.load %arg2[%c0_1, %c0_2] : memref<128x384xbf16, #tpu.memory_space<vmem>>, vector<128x384xbf16>
    %cst = arith.constant dense<0.000000e+00> : vector<16x384xf32>
    %2 = tpu.matmul %0, %1, %cst {dimension_numbers = #tpu.dot_dimension_numbers<[1], [0], [0], [1], [0, 0, 1, 1], [], []>} : vector<16x128xbf16>, vector<128x384xbf16>, vector<16x384xf32> -> vector<16x384xf32>
    %c0_3 = arith.constant 0 : index
    %c0_4 = arith.constant 0 : index
    %3 = vector.load %arg3[%c0_3, %c0_4] : memref<1x384xf32, #tpu.memory_space<vmem>>, vector<1x384xf32>
    %4 = vector.broadcast %3 : vector<1x384xf32> to vector<16x384xf32>
    %5 = arith.addf %2, %4 : vector<16x384xf32>
    %6 = math.tanh %5 : vector<16x384xf32>
    %7 = arith.truncf %6 : vector<16x384xf32> to vector<16x384xbf16>
    %8 = vector.extract_strided_slice %7 {offsets = [0, 0], sizes = [16, 128], strides = [1, 1]} : vector<16x384xbf16> to vector<16x128xbf16>
    %c0_5 = arith.constant 0 : index
    %c0_6 = arith.constant 0 : index
    %c0_7 = arith.constant 0 : index
    %9 = vector.load %arg4[%c0_5, %c0_6, %c0_7] : memref<3x128x128xbf16, #tpu.memory_space<vmem>>, vector<1x128x128xbf16>
    %10 = vector.shape_cast %9 : vector<1x128x128xbf16> to vector<128x128xbf16>
    %cst_8 = arith.constant dense<0.000000e+00> : vector<16x128xf32>
    %11 = tpu.matmul %8, %10, %cst_8 {dimension_numbers = #tpu.dot_dimension_numbers<[1], [0], [0], [1], [0, 0, 1, 1], [], []>} : vector<16x128xbf16>, vector<128x128xbf16>, vector<16x128xf32> -> vector<16x128xf32>
    %c0_9 = arith.constant 0 : index
    %c0_10 = arith.constant 0 : index
    %c0_11 = arith.constant 0 : index
    %12 = vector.load %arg5[%c0_9, %c0_10, %c0_11] : memref<3x1x128xf32, #tpu.memory_space<vmem>>, vector<1x1x128xf32>
    %13 = vector.shape_cast %12 : vector<1x1x128xf32> to vector<1x128xf32>
    %14 = vector.broadcast %13 : vector<1x128xf32> to vector<16x128xf32>
    %15 = arith.addf %11, %14 : vector<16x128xf32>
    %c0_12 = arith.constant 0 : index
    %c0_13 = arith.constant 0 : index
    %c0_14 = arith.constant 0 : index
    %16 = vector.load %arg6[%c0_12, %c0_13, %c0_14] : memref<3x16x128xf32, #tpu.memory_space<vmem>>, vector<1x16x128xf32>
    %17 = vector.shape_cast %16 : vector<1x16x128xf32> to vector<16x128xf32>
    %18 = vector.shape_cast %15 : vector<16x128xf32> to vector<1x16x128xf32>
    tpu.vector_store %arg6[%c0_12, %c0_13, %c0_14], %18 {strides = array<i32>} : memref<3x16x128xf32, #tpu.memory_space<vmem>>, vector<1x16x128xf32>,
    %19 = vector.extract_strided_slice %7 {offsets = [0, 128], sizes = [16, 128], strides = [1, 1]} : vector<16x384xbf16> to vector<16x128xbf16>
    %c1 = arith.constant 1 : index
    %c0_15 = arith.constant 0 : index
    %c0_16 = arith.constant 0 : index
    %20 = vector.load %arg4[%c1, %c0_15, %c0_16] : memref<3x128x128xbf16, #tpu.memory_space<vmem>>, vector<1x128x128xbf16>
    %21 = vector.shape_cast %20 : vector<1x128x128xbf16> to vector<128x128xbf16>
    %cst_17 = arith.constant dense<0.000000e+00> : vector<16x128xf32>
    %22 = tpu.matmul %19, %21, %cst_17 {dimension_numbers = #tpu.dot_dimension_numbers<[1], [0], [0], [1], [0, 0, 1, 1], [], []>} : vector<16x128xbf16>, vector<128x128xbf16>, vector<16x128xf32> -> vector<16x128xf32>
    %c1_18 = arith.constant 1 : index
    %c0_19 = arith.constant 0 : index
    %c0_20 = arith.constant 0 : index
    %23 = vector.load %arg5[%c1_18, %c0_19, %c0_20] : memref<3x1x128xf32, #tpu.memory_space<vmem>>, vector<1x1x128xf32>
    %24 = vector.shape_cast %23 : vector<1x1x128xf32> to vector<1x128xf32>
    %25 = vector.broadcast %24 : vector<1x128xf32> to vector<16x128xf32>
    %26 = arith.addf %22, %25 : vector<16x128xf32>
    %c1_21 = arith.constant 1 : index
    %c0_22 = arith.constant 0 : index
    %c0_23 = arith.constant 0 : index
    %27 = vector.load %arg6[%c1_21, %c0_22, %c0_23] : memref<3x16x128xf32, #tpu.memory_space<vmem>>, vector<1x16x128xf32>
    %28 = vector.shape_cast %27 : vector<1x16x128xf32> to vector<16x128xf32>
    %29 = vector.shape_cast %26 : vector<16x128xf32> to vector<1x16x128xf32>
    tpu.vector_store %arg6[%c1_21, %c0_22, %c0_23], %29 {strides = array<i32>} : memref<3x16x128xf32, #tpu.memory_space<vmem>>, vector<1x16x128xf32>,
    %30 = vector.extract_strided_slice %7 {offsets = [0, 256], sizes = [16, 128], strides = [1, 1]} : vector<16x384xbf16> to vector<16x128xbf16>
    %c2 = arith.constant 2 : index
    %c0_24 = arith.constant 0 : index
    %c0_25 = arith.constant 0 : index
    %31 = vector.load %arg4[%c2, %c0_24, %c0_25] : memref<3x128x128xbf16, #tpu.memory_space<vmem>>, vector<1x128x128xbf16>
    %32 = vector.shape_cast %31 : vector<1x128x128xbf16> to vector<128x128xbf16>
    %cst_26 = arith.constant dense<0.000000e+00> : vector<16x128xf32>
    %33 = tpu.matmul %30, %32, %cst_26 {dimension_numbers = #tpu.dot_dimension_numbers<[1], [0], [0], [1], [0, 0, 1, 1], [], []>} : vector<16x128xbf16>, vector<128x128xbf16>, vector<16x128xf32> -> vector<16x128xf32>
    %c2_27 = arith.constant 2 : index
    %c0_28 = arith.constant 0 : index
    %c0_29 = arith.constant 0 : index
    %34 = vector.load %arg5[%c2_27, %c0_28, %c0_29] : memref<3x1x128xf32, #tpu.memory_space<vmem>>, vector<1x1x128xf32>
    %35 = vector.shape_cast %34 : vector<1x1x128xf32> to vector<1x128xf32>
    %36 = vector.broadcast %35 : vector<1x128xf32> to vector<16x128xf32>
    %37 = arith.addf %33, %36 : vector<16x128xf32>
    %c2_30 = arith.constant 2 : index
    %c0_31 = arith.constant 0 : index
    %c0_32 = arith.constant 0 : index
    %38 = vector.load %arg6[%c2_30, %c0_31, %c0_32] : memref<3x16x128xf32, #tpu.memory_space<vmem>>, vector<1x16x128xf32>
    %39 = vector.shape_cast %38 : vector<1x16x128xf32> to vector<16x128xf32>
    %40 = vector.shape_cast %37 : vector<16x128xf32> to vector<1x16x128xf32>
    tpu.vector_store %arg6[%c2_30, %c0_31, %c0_32], %40 {strides = array<i32>} : memref<3x16x128xf32, #tpu.memory_space<vmem>>, vector<1x16x128xf32>,
    return
  }
  func.func @transform_0(%arg0: i32) -> (i32, i32) {
    %c0_i32 = arith.constant 0 : i32
    %c0_i32_0 = arith.constant 0 : i32
    return %arg0, %c0_i32 : i32, i32
  }
  func.func @transform_1(%arg0: i32) -> (i32, i32) {
    %c0_i32 = arith.constant 0 : i32
    %c0_i32_0 = arith.constant 0 : i32
    %c0_i32_1 = arith.constant 0 : i32
    return %c0_i32, %c0_i32_0 : i32, i32
  }
  func.func @transform_2(%arg0: i32) -> (i32, i32) {
    %c0_i32 = arith.constant 0 : i32
    %c0_i32_0 = arith.constant 0 : i32
    %c0_i32_1 = arith.constant 0 : i32
    return %c0_i32, %c0_i32_0 : i32, i32
  }
  func.func @transform_3(%arg0: i32) -> (i32, i32, i32) {
    %c0_i32 = arith.constant 0 : i32
    %c0_i32_0 = arith.constant 0 : i32
    %c0_i32_1 = arith.constant 0 : i32
    %c0_i32_2 = arith.constant 0 : i32
    return %c0_i32, %c0_i32_0, %c0_i32_1 : i32, i32, i32
  }
  func.func @transform_4(%arg0: i32) -> (i32, i32, i32) {
    %c0_i32 = arith.constant 0 : i32
    %c0_i32_0 = arith.constant 0 : i32
    %c0_i32_1 = arith.constant 0 : i32
    %c0_i32_2 = arith.constant 0 : i32
    return %c0_i32, %c0_i32_0, %c0_i32_1 : i32, i32, i32
  }
  func.func @transform_5(%arg0: i32) -> (i32, i32, i32) {
    %c0_i32 = arith.constant 0 : i32
    %c0_i32_0 = arith.constant 0 : i32
    %c0_i32_1 = arith.constant 0 : i32
    return %c0_i32, %arg0, %c0_i32_0 : i32, i32, i32
  }
}

</mosaic_0001>

<bundles_post_ra>
// kernel: tpu_custom_call.1
= control target key start
LH: loop header
LB: loop body
LE: loop exit
PB: predicated region body
PF: predicated region fallthrough
CT: control target
= control target key end

     0   :  { %10 = vsyncpa [#allocation3], 0  ;;  %s1196_s0 = inlined_call_operand.hbm [shape: bf16[16,128], index: 0, kind: input, shape index: {}]   ;;  %s1197_s1 = inlined_call_operand.hbm [shape: bf16[128,384], index: 1, kind: input, shape index: {}]   ;;  %s1198_s2 = inlined_call_operand.vmem [shape: f32[1,384], index: 2, kind: input, shape index: {}]   ;;  %s1199_s3 = inlined_call_operand.hbm [shape: bf16[3,128,128], index: 3, kind: input, shape index: {}]   ;;  %s1200_s4 = inlined_call_operand.vmem [shape: f32[3,1,128], index: 4, kind: input, shape index: {}]   ;;  %s1201_s5 = inlined_call_operand.hbm [shape: f32[3,16,128], index: 5, kind: output, shape index: {}]  }
   0x1   :  { %11 = vsyncpa [#allocation6], 0 }
   0x2   :  { %12 = vsyncpa [#allocation4], 0  ;;  %s1053_s18 = smov [#allocation5]   ;;  %s959_s22 = scalar_lea.hbm %s1197_s1, 3072 }
   0x3   :  { %s30_s19 = sshll.u32 %s1053_s18, 4  ;;  %p960_p0 = scmp.ne.s32.totalorder %s1197_s1, %s959_s22  ;;  %s31_s19 = int_to_ptr.vmem [resolvable:$true] %s30_s19 }
   0x4   :  { %p963_p1 = scmp.lt.u32.totalorder %s959_s22, %s1197_s1 }
   0x6   :  { %p965_p2 = pnand %p963_p1, %p960_p0 }
   0x8   :  { %968 = shalt.err (!%p965_p2)
}
   0x9   :  { %s969_s27 = scalar_lea.vmem %s31_s19, 3072  ;;  %p974_p4 = scmp.lt.s32.totalorder %s31_s19, %s31_s19 }
   0xa   :  { %p970_p3 = scmp.ne.s32.totalorder %s31_s19, %s969_s27  ;;  %p975_p5 = scmp.lt.s32.totalorder %s969_s27, %s969_s27 }
   0xc   :  { %p976_p6 = por %p975_p5, %p974_p4 }
   0xe   :  { %p977_p7 = pnand %p976_p6, %p970_p3 }
  0x10   :  { %980 = shalt.err (!%p977_p7)
}
  0x11   :  { %s1054_s28 = smov 192   ;;  %s1055_s29 = smov 12  }
  0x12   :  { %36 = dma.hbm_to_vmem [thread:$0]  %s1197_s1, 3072, %s31_s19, [#allocation6], %s1054_s28, %s1054_s28, %s1055_s29  }
  0x13   :  { %s1056_s7 = smov [#allocation2]   ;;  %s981_s11 = scalar_lea.hbm %s1196_s0, 128 }
  0x14   :  { %s18_s8 = sshll.u32 %s1056_s7, 4  ;;  %p982_p8 = scmp.ne.s32.totalorder %s1196_s0, %s981_s11  ;;  %s19_s8 = int_to_ptr.vmem [resolvable:$true] %s18_s8 }
  0x15   :  { %p985_p9 = scmp.lt.u32.totalorder %s981_s11, %s1196_s0 }
  0x17   :  { %p987_p10 = pnand %p985_p9, %p982_p8 }
  0x19   :  { %990 = shalt.err (!%p987_p10)
}
  0x1a   :  { %s991_s16 = scalar_lea.vmem %s19_s8, 128  ;;  %p996_p12 = scmp.lt.s32.totalorder %s19_s8, %s19_s8 }
  0x1b   :  { %p992_p11 = scmp.ne.s32.totalorder %s19_s8, %s991_s16  ;;  %p997_p13 = scmp.lt.s32.totalorder %s991_s16, %s991_s16 }
  0x1d   :  { %p998_p0 = por %p997_p13, %p996_p12 }
  0x1f   :  { %p999_p1 = pnand %p998_p0, %p992_p11 }
  0x21   :  { %1002 = shalt.err (!%p999_p1)
}
  0x22   :  { %s1057_s1 = smov 64   ;;  %s1058_s17 = smov 4  }
  0x23   :  { %24 = dma.hbm_to_vmem [thread:$0]  %s1196_s0, 128, %s19_s8, [#allocation3], %s1057_s1, %s1057_s1, %s1058_s17  }
  0x24   :  { %s1059_s20 = smov [#allocation7]   ;;  %s1003_s24 = scalar_lea.hbm %s1199_s3, 3072 }
  0x25   :  { %s44_s21 = sshll.u32 %s1059_s20, 4  ;;  %p1004_p2 = scmp.ne.s32.totalorder %s1199_s3, %s1003_s24  ;;  %s45_s21 = int_to_ptr.vmem [resolvable:$true] %s44_s21 }
  0x26   :  { %p1007_p3 = scmp.lt.u32.totalorder %s1003_s24, %s1199_s3 }
  0x28   :  { %p1009_p4 = pnand %p1007_p3, %p1004_p2 }
  0x2a   :  { %1012 = shalt.err (!%p1009_p4)
}
  0x2b   :  { %s1013_s29 = scalar_lea.vmem %s45_s21, 3072  ;;  %p1018_p6 = scmp.lt.s32.totalorder %s45_s21, %s45_s21 }
  0x2c   :  { %p1014_p5 = scmp.ne.s32.totalorder %s45_s21, %s1013_s29  ;;  %p1019_p7 = scmp.lt.s32.totalorder %s1013_s29, %s1013_s29 }
  0x2e   :  { %p1020_p8 = por %p1019_p7, %p1018_p6 }
  0x30   :  { %p1021_p9 = pnand %p1020_p8, %p1014_p5 }
  0x32   :  { %1024 = shalt.err (!%p1021_p9)
}
  0x33   :  { %50 = dma.hbm_to_vmem [thread:$0]  %s1199_s3, 3072, %s45_s21, [#allocation6], %s1057_s1, %s1057_s1, %s1058_s17  }
  0x34   :  { %1047 = dma.done.wait [#allocation3], 128  }
  0x35   :  { %1048 = vsyncadd [#allocation3], 4294967168 }
  0x36   :  { %1049 = dma.done.wait [#allocation6], 6144  }
  0x37   :  { %1050 = vsyncadd [#allocation6], 4294961152  ;;  %v1060_v0 = vmov 0.0   ;;  %v1061_v1 = vmov 0   ;;  %vm1062_vm0 = vmmov 0   ;;  %v915_v24 = vld [vmem:[#allocation2] sm:$0xff]   ;;  %v99_v43 = vlaneseq }
  0x38   :  { %797 = vmatprep.subr.bf16.mxu1 %v1060_v0  ;;  %280 = vmatprep.mubr.bf16.mxu0 %v1061_v1  ;;  %v890_v2 = vld [vmem:[#allocation5 + $0x4] ss:$12 sps:$4 sm:$0xff]   ;;  %v892_v3 = vld [vmem:[#allocation5] ss:$12 sps:$4 sm:$0xff]   ;;  %v893_v4 = vld [vmem:[#allocation5 + $0x1c] ss:$12 sps:$4 sm:$0xff]  }
  0x39   :  { %813 = vmatprep.mubr.msk.bf16.mxu1 %vm1062_vm0, %v1060_v0  ;;  %248 = vmatprep.subr.bf16.mxu0 %v890_v2  ;;  %v895_v5 = vld [vmem:[#allocation5 + $0x18] ss:$12 sps:$4 sm:$0xff]   ;;  %v896_v6 = vld [vmem:[#allocation5 + $0x34] ss:$12 sps:$4 sm:$0xff]   ;;  %v898_v7 = vld [vmem:[#allocation5 + $0x30] ss:$12 sps:$4 sm:$0xff]  }
  0x3a   :  { %249 = vmatpush1.bf16.msra.mxu0 %v892_v3  ;;  %v899_v8 = vld [vmem:[#allocation5 + $0x4c] ss:$12 sps:$4 sm:$0xff]   ;;  %v901_v9 = vld [vmem:[#allocation5 + $0x48] ss:$12 sps:$4 sm:$0xff]   ;;  %v902_v11 = vld [vmem:[#allocation5 + $0x64] ss:$12 sps:$4 sm:$0xff]  }
  0x3b   :  { %250 = vmatprep.subr.bf16.mxu0 %v893_v4  ;;  %v914_v10 = vld [vmem:[#allocation5 + $0x8] ss:$12 sps:$4 sm:$0xff]   ;;  %v916_v12 = vld [vmem:[#allocation5 + $0x20] ss:$12 sps:$4 sm:$0xff]   ;;  %v917_v15 = vld [vmem:[#allocation5 + $0x38] ss:$12 sps:$4 sm:$0xff]  }
  0x3c   :  { %798 = vmatpush3.bf16.msra.mxu1 %v914_v10  ;;  %v904_v13 = vld [vmem:[#allocation5 + $0x60] ss:$12 sps:$4 sm:$0xff]   ;;  %v905_v14 = vld [vmem:[#allocation5 + $0x7c] ss:$12 sps:$4 sm:$0xff]   ;;  %v907_v16 = vld [vmem:[#allocation5 + $0x78] ss:$12 sps:$4 sm:$0xff]  }
  0x3d   :  { %799 = vmatprep.subr.bf16.mxu1 %v1060_v0  ;;  %v908_v17 = vld [vmem:[#allocation5 + $0x94] ss:$12 sps:$4 sm:$0xff]   ;;  %v918_v18 = vld [vmem:[#allocation5 + $0x50] ss:$12 sps:$4 sm:$0xff]   ;;  %v911_v20 = vld [vmem:[#allocation5 + $0xac] ss:$12 sps:$4 sm:$0xff]  }
  0x3e   :  { %251 = vmatpush1.bf16.msra.mxu0 %v895_v5  ;;  %v910_v19 = vld [vmem:[#allocation5 + $0x90] ss:$12 sps:$4 sm:$0xff]   ;;  %v919_v21 = vld [vmem:[#allocation5 + $0x68] ss:$12 sps:$4 sm:$0xff]   ;;  %v920_v23 = vld [vmem:[#allocation5 + $0x80] ss:$12 sps:$4 sm:$0xff]  }
  0x3f   :  { %252 = vmatprep.subr.bf16.mxu0 %v896_v6  ;;  %v913_v22 = vld [vmem:[#allocation5 + $0xa8] ss:$12 sps:$4 sm:$0xff]   ;;  %v923_v25 = vld [vmem:[#allocation7] sm:$0xff]   ;;  %v922_v28 = vld [vmem:[#allocation5 + $0xb0] ss:$12 sps:$4 sm:$0xff]   ;;  %v100_v44 = vshrl.u32 %v99_v43, 7 }
  0x40   :  { %800 = vmatpush3.bf16.msra.mxu1 %v916_v12  ;;  %v921_v26 = vld [vmem:[#allocation5 + $0x98] ss:$12 sps:$4 sm:$0xff]   ;;  %v925_v27 = vld [vmem:[#allocation7 + $0x8] sm:$0xff]   ;;  %v927_v29 = vld [vmem:[#allocation7 + $0x10] sm:$0xff]   ;;  %s1063_s12 = smov [#allocation8]  }
  0x41   :  { %801 = vmatprep.subr.bf16.mxu1 %v1060_v0  ;;  %v924_v30 = vld [vmem:[#allocation7 + $0x40] sm:$0xff]   ;;  %v929_v31 = vld [vmem:[#allocation7 + $0x18] sm:$0xff]   ;;  %v926_v32 = vld [vmem:[#allocation7 + $0x48] sm:$0xff]   ;;  %v101_v45 = vsub.s32 0, %v100_v44  ;;  %v105_v47 = vsub.s32 1, %v100_v44  ;;  %v109_v57 = vsub.s32 2, %v100_v44 }
  0x42   :  { %253 = vmatpush1.bf16.msra.mxu0 %v898_v7  ;;  %v928_v33 = vld [vmem:[#allocation7 + $0x50] sm:$0xff]   ;;  %v930_v34 = vld [vmem:[#allocation7 + $0x58] sm:$0xff]   ;;  %v931_v35 = vld [vmem:[#allocation7 + $0x20] sm:$0xff]   ;;  %s694_s13 = sshll.u32 %s1063_s12, 4  ;;  %s695_s13 = int_to_ptr.vmem [resolvable:$true] %s694_s13 }
  0x43   :  { %254 = vmatprep.subr.bf16.mxu0 %v899_v8  ;;  %v932_v36 = vld [vmem:[#allocation7 + $0x60] sm:$0xff]   ;;  %v933_v37 = vld [vmem:[#allocation7 + $0x28] sm:$0xff]   ;;  %v935_v39 = vld [vmem:[#allocation7 + $0x30] sm:$0xff]   ;;  %s1025_s14 = scalar_lea.vmem %s695_s13, 768  ;;  %p1030_p11 = scmp.lt.s32.totalorder %s695_s13, %s695_s13 }
  0x44   :  { %802 = vmatpush3.bf16.msra.mxu1 %v917_v15  ;;  %v934_v38 = vld [vmem:[#allocation7 + $0x68] sm:$0xff]   ;;  %v936_v40 = vld [vmem:[#allocation7 + $0x70] sm:$0xff]   ;;  %v937_v41 = vld [vmem:[#allocation7 + $0x38] sm:$0xff]   ;;  %p1026_p10 = scmp.ne.s32.totalorder %s695_s13, %s1025_s14  ;;  %p1031_p12 = scmp.lt.s32.totalorder %s1025_s14, %s1025_s14 }
  0x45   :  { %803 = vmatprep.subr.bf16.mxu1 %v1060_v0  ;;  %v938_v42 = vld [vmem:[#allocation7 + $0x78] sm:$0xff]   ;;  %v939_v6 = vld [vmem:[#allocation7 + $0x80] sm:$0xff]   ;;  %v940_v10 = vld [vmem:[#allocation7 + $0x88] sm:$0xff]  }
  0x46   :  { %255 = vmatpush1.bf16.msra.mxu0 %v901_v9  ;;  %v97_v46 = vld [vmem:[%s1198_s2] sm:$0x7]  ;;  %v941_v12 = vld [vmem:[#allocation7 + $0x90] sm:$0xff]   ;;  %p1032_p13 = por %p1031_p12, %p1030_p11 }
  0x47   :  { %256 = vmatprep.subr.bf16.mxu0 %v902_v11  ;;  %v102_v48 = vrot.slane %v97_v46, %v101_v45  ;;  %v106_v49 = vrot.slane %v97_v46, %v105_v47  ;;  %v110_v59 = vrot.slane %v97_v46, %v109_v57  ;;  %v942_v15 = vld [vmem:[#allocation7 + $0x98] sm:$0xff]  }
  0x48   :  { %804 = vmatpush3.bf16.msra.mxu1 %v918_v18  ;;  %v945_v18 = vld [vmem:[#allocation7 + $0xb0] sm:$0xff]   ;;  %p1033_p0 = pnand %p1032_p13, %p1026_p10 }
  0x49   :  { %805 = vmatprep.subr.bf16.mxu1 %v1060_v0 }
  0x4a   :  { %257 = vmatpush1.bf16.msra.mxu0 %v904_v13 }
  0x4b   :  { %258 = vmatprep.subr.bf16.mxu0 %v905_v14 }
  0x4c   :  { %806 = vmatpush3.bf16.msra.mxu1 %v919_v21  ;;  %v742_v21 = vld [vmem:[%s1200_s4 + $0x1] ss:$0 sm:$0xff] }
  0x4d   :  { %807 = vmatprep.subr.bf16.mxu1 %v1060_v0 }
  0x4e   :  { %259 = vmatpush1.bf16.msra.mxu0 %v907_v16  ;;  %v943_v16 = vld [vmem:[#allocation7 + $0xa0] sm:$0xff]  }
  0x4f   :  { %260 = vmatprep.subr.bf16.mxu0 %v908_v17  ;;  %v944_v17 = vld [vmem:[#allocation7 + $0xa8] sm:$0xff]  }
  0x50   :  { %808 = vmatpush3.bf16.msra.mxu1 %v920_v23 }
  0x51   :  { %809 = vmatprep.subr.bf16.mxu1 %v1060_v0 }
  0x52   :  { %261 = vmatpush1.bf16.msra.mxu0 %v910_v19  ;;  %v946_v19 = vld [vmem:[#allocation7 + $0xb8] sm:$0xff]  }
  0x53   :  { %262 = vmatprep.subr.bf16.mxu0 %v911_v20  ;;  %v732_v20 = vld [vmem:[%s1200_s4] ss:$0 sm:$0xff] }
  0x54   :  { %810 = vmatpush3.bf16.msra.mxu1 %v921_v26 }
  0x55   :  { %811 = vmatprep.subr.bf16.mxu1 %v1060_v0 }
  0x56   :  { %263 = vmatpush1.bf16.msra.mxu0 %v913_v22 }
  0x57   :  { %817 = vmatprep.subr.bf16.mxu0 %v1060_v0 }
  0x58   :  { %812 = vmatpush3.bf16.msra.mxu1 %v922_v28 }
  0x59   :  { %281 = vmatmul.mubr.bf16.vlgmr.msra.gmra.mrb[0].mxu0 %v915_v24  ;;  %837 = vmatprep.subr.bf16.mxu1 %v1060_v0 }
  0x5a   :  { %818 = vmatpush3.bf16.msra.mxu0 %v923_v25  ;;  %833 = vmatprep.mubr.msk.bf16.mxu0 %vm1062_vm0, %v1060_v0 }
  0x5b   :  { %819 = vmatprep.subr.bf16.mxu0 %v1060_v0  ;;  %814 = vmatmul.mubr.bf16.vlgmr.msra.gmra.mrb[0].mxu1 %v915_v24 }
  0x5c   :  { %838 = vmatpush3.bf16.msra.mxu1 %v924_v30  ;;  %853 = vmatprep.mubr.msk.bf16.mxu1 %vm1062_vm0, %v1060_v0 }
  0x5d   :  { %839 = vmatprep.subr.bf16.mxu1 %v1060_v0 }
  0x5e   :  { %820 = vmatpush3.bf16.msra.mxu0 %v925_v27 }
  0x5f   :  { %821 = vmatprep.subr.bf16.mxu0 %v1060_v0 }
  0x60   :  { %840 = vmatpush3.bf16.msra.mxu1 %v926_v32 }
  0x61   :  { %841 = vmatprep.subr.bf16.mxu1 %v1060_v0 }
  0x62   :  { %822 = vmatpush3.bf16.msra.mxu0 %v927_v29 }
  0x63   :  { %823 = vmatprep.subr.bf16.mxu0 %v1060_v0 }
  0x64   :  { %842 = vmatpush3.bf16.msra.mxu1 %v928_v33  ;;  %v752_v33 = vld [vmem:[%s1200_s4 + $0x2] ss:$0 sm:$0xff] }
  0x65   :  { %843 = vmatprep.subr.bf16.mxu1 %v1060_v0 }
  0x66   :  { %824 = vmatpush3.bf16.msra.mxu0 %v929_v31 }
  0x67   :  { %825 = vmatprep.subr.bf16.mxu0 %v1060_v0 }
  0x68   :  { %844 = vmatpush3.bf16.msra.mxu1 %v930_v34 }
  0x69   :  { %845 = vmatprep.subr.bf16.mxu1 %v1060_v0 }
  0x6a   :  { %826 = vmatpush3.bf16.msra.mxu0 %v931_v35 }
  0x6b   :  { %827 = vmatprep.subr.bf16.mxu0 %v1060_v0 }
  0x6c   :  { %846 = vmatpush3.bf16.msra.mxu1 %v932_v36 }
  0x6d   :  { %847 = vmatprep.subr.bf16.mxu1 %v1060_v0 }
  0x6e   :  { %828 = vmatpush3.bf16.msra.mxu0 %v933_v37 }
  0x6f   :  { %829 = vmatprep.subr.bf16.mxu0 %v1060_v0 }
  0x70   :  { %848 = vmatpush3.bf16.msra.mxu1 %v934_v38 }
  0x71   :  { %849 = vmatprep.subr.bf16.mxu1 %v1060_v0 }
  0x72   :  { %830 = vmatpush3.bf16.msra.mxu0 %v935_v39 }
  0x73   :  { %831 = vmatprep.subr.bf16.mxu0 %v1060_v0 }
  0x74   :  { %850 = vmatpush3.bf16.msra.mxu1 %v936_v40 }
  0x75   :  { %851 = vmatprep.subr.bf16.mxu1 %v1060_v0 }
  0x76   :  { %832 = vmatpush3.bf16.msra.mxu0 %v937_v41 }
  0x77   :  { %857 = vmatprep.subr.bf16.mxu0 %v1060_v0 }
  0x78   :  { %852 = vmatpush3.bf16.msra.mxu1 %v938_v42 }
 0x12c   :  { %v282_v50 = vpop.f32.mrb[0].mxu0 }
 0x12d   :  { %v283_v51 = vadd.f32 %v282_v50, %v102_v48  ;;  %v284_v52 = vpop.f32.mrb[1].mxu0 }
 0x12e   :  { %v285_v53 = vadd.f32 %v284_v52, %v106_v49  ;;  %v286_v54 = vpop.f32.mrb[2].mxu0  ;;  %v325_v60 = vpop.f32.mrb[0].mxu1 }
 0x12f   :  { %947 = vtanh.f32 %v283_v51  ;;  %v287_v55 = vadd.f32 %v286_v54, %v102_v48  ;;  %v288_v56 = vpop.f32.mrb[3].mxu0  ;;  %v326_v61 = vadd.f32 %v325_v60, %v110_v59  ;;  %v815_v62 = vpop.f32.mrb[1].mxu1 }
 0x130   :  { %949 = vtanh.f32 %v285_v53  ;;  %v289_v58 = vadd.f32 %v288_v56, %v106_v49  ;;  %v328_v63 = vpop.f32.mrb[2].mxu1 }
 0x131   :  { %951 = vtanh.f32 %v287_v55  ;;  %v329_v2 = vadd.f32 %v328_v63, %v110_v59  ;;  %v816_v3 = vpop.f32.mrb[3].mxu1 }
 0x132   :  { %953 = vtanh.f32 %v289_v58 }
 0x133   :  { %955 = vtanh.f32 %v326_v61 }
 0x134   :  { %957 = vtanh.f32 %v329_v2 }
 0x139   :  { %v948_v1 = vpop.eup %947 }
 0x13a   :  { %v950_v4 = vpop.eup %949 }
 0x13b   :  { %v952_v5 = vpop.eup %951 }
 0x13c   :  { %v954_v7 = vpop.eup %953  ;;  %v338_v8 = vpack.c.bf16 %v952_v5, %v948_v1 }
 0x13d   :  { %v339_v9 = vpack.c.bf16 %v954_v7, %v950_v4  ;;  %v956_v11 = vpop.eup %955 }
 0x13e   :  { %834 = vmatmul.mubr.bf16.vlgmr.msra.gmra.mrb[4].mxu0 %v338_v8  ;;  %v958_v13 = vpop.eup %957 }
 0x13f   :  { %858 = vmatpush3.bf16.msra.mxu0 %v939_v6  ;;  %854 = vmatmul.mubr.bf16.vlgmr.msra.gmra.mrb[4].mxu1 %v339_v9  ;;  %v340_v14 = vpack.c.bf16 %v958_v13, %v956_v11 }
 0x140   :  { %859 = vmatprep.subr.bf16.mxu0 %v1060_v0  ;;  %873 = vmatprep.mubr.msk.bf16.mxu0 %vm1062_vm0, %v1060_v0 }
 0x143   :  { %860 = vmatpush3.bf16.msra.mxu0 %v940_v10 }
 0x144   :  { %861 = vmatprep.subr.bf16.mxu0 %v1060_v0 }
 0x147   :  { %862 = vmatpush3.bf16.msra.mxu0 %v941_v12 }
 0x148   :  { %863 = vmatprep.subr.bf16.mxu0 %v1060_v0 }
 0x14b   :  { %864 = vmatpush3.bf16.msra.mxu0 %v942_v15 }
 0x14c   :  { %865 = vmatprep.subr.bf16.mxu0 %v1060_v0 }
 0x14f   :  { %866 = vmatpush3.bf16.msra.mxu0 %v943_v16 }
 0x150   :  { %867 = vmatprep.subr.bf16.mxu0 %v1060_v0 }
 0x153   :  { %868 = vmatpush3.bf16.msra.mxu0 %v944_v17 }
 0x154   :  { %869 = vmatprep.subr.bf16.mxu0 %v1060_v0 }
 0x157   :  { %870 = vmatpush3.bf16.msra.mxu0 %v945_v18 }
 0x158   :  { %871 = vmatprep.subr.bf16.mxu0 %v1060_v0 }
 0x15b   :  { %872 = vmatpush3.bf16.msra.mxu0 %v946_v19 }
 0x15e   :  { %874 = vmatmul.mubr.bf16.vlgmr.msra.gmra.mrb[8].mxu0 %v340_v14 }
 0x211   :  { %v446_v22 = vpop.f32.mrb[4].mxu0 }
 0x212   :  { %v447_v23 = vadd.f32 %v732_v20, %v446_v22  ;;  %v835_v24 = vpop.f32.mrb[5].mxu0  ;;  %v562_v25 = vpop.f32.mrb[4].mxu1 }
 0x213   :  { %v563_v26 = vadd.f32 %v742_v21, %v562_v25  ;;  %v449_v27 = vpop.f32.mrb[6].mxu0  ;;  %v855_v28 = vpop.f32.mrb[5].mxu1 }
 0x214   :  { %453 = vst [vmem:[#allocation8] sm:$0xff] %v447_v23  ;;  %v450_v29 = vadd.f32 %v732_v20, %v449_v27  ;;  %v836_v0 = vpop.f32.mrb[7].mxu0  ;;  %v565_v30 = vpop.f32.mrb[6].mxu1 }
 0x215   :  { %570 = vst [vmem:[#allocation8 + $0x10] sm:$0xff] %v563_v26  ;;  %v566_v31 = vadd.f32 %v742_v21, %v565_v30  ;;  %v856_v32 = vpop.f32.mrb[7].mxu1 }
 0x216   :  { %454 = vst [vmem:[#allocation8 + $0x8] sm:$0xff] %v450_v29 }
 0x217   :  { %571 = vst [vmem:[#allocation8 + $0x18] sm:$0xff] %v566_v31 }
 0x231   :  { %v679_v34 = vpop.f32.mrb[8].mxu0 }
 0x232   :  { %v680_v35 = vadd.f32 %v752_v33, %v679_v34  ;;  %v875_v36 = vpop.f32.mrb[9].mxu0 }
 0x233   :  { %v682_v37 = vpop.f32.mrb[10].mxu0 }
 0x234   :  { %687 = vst [vmem:[#allocation8 + $0x20] sm:$0xff] %v680_v35  ;;  %v683_v38 = vadd.f32 %v752_v33, %v682_v37  ;;  %v876_v39 = vpop.f32.mrb[11].mxu0 }
 0x236   :  { %688 = vst [vmem:[#allocation8 + $0x28] sm:$0xff] %v683_v38 }
 0x237   :  { %1036 = shalt.err (!%p1033_p0)
}
 0x238   :  { %s1037_s16 = scalar_lea.hbm %s1201_s5, 768 }
 0x239   :  { %p1038_p1 = scmp.ne.s32.totalorder %s1201_s5, %s1037_s16  ;;  %p1041_p2 = scmp.lt.u32.totalorder %s1037_s16, %s1201_s5 }
 0x23b   :  { %p1043_p3 = pnand %p1041_p2, %p1038_p1 }
 0x23d   :  { %1046 = shalt.err (!%p1043_p3)
}
 0x23e   :  { %s1064_s20 = smov 128   ;;  %s1065_s21 = smov 8  }
 0x23f   :  { %700 = dma.vmem_to_hbm [thread:$0]  %s695_s13, 768, %s1201_s5, [#allocation4], %s1064_s20, %s1064_s20, %s1065_s21  }
 0x240   :  { %1051 = dma.done.wait [#allocation4], 768  }
 0x241   :  { %1052 = vsyncadd [#allocation4], 4294966528 }
 0x242   :  { %704 = vsyncpa [#allocation3], 1 }
 0x243   :  { %705 = vsyncpa [#allocation6], 1 }
 0x244   :  { %706 = vsyncpa [#allocation4], 1 }

</bundles_post_ra>
